<compile_context>
chip_gen: v6e
topology: v6e:2x2x1
jax: 0.10.0
libtpu: 0.0.40
codegen_flags: <defaults>
</compile_context>

<pallas_src>
import functools
import math

import jax
import jax.numpy as jnp
import numpy as np
from jax.experimental import pallas as pl
from jax.experimental.pallas import tpu as pltpu

_VMEM_LIMIT = 28 * 1024 * 1024


def _round_up(v, m):
    return (v + m - 1) // m * m


def _phys(c):
    # 64-channel maps get 64 zero channels appended -> lane-dense (128) layout.
    return 128 if c == 64 else c


def _pad_vec(v, n, fill):
    v = jnp.asarray(v, jnp.float32)
    if v.shape[0] == n:
        return v
    return jnp.concatenate([v, jnp.full((n - v.shape[0],), fill, jnp.float32)])


def make_epi(n_phys, sa=None, ba=None, sc=None, bc=None, alpha=None):
    """Pack per-channel epilogue vectors into one (8, n) f32 operand.

    Rows: 0=sa 1=ba 2=sc 3=bc 4=alpha.  Epilogue: y = act(acc*sa + ba)*sc + bc.
    Pad values are chosen so zero-padded channels stay exactly zero.
    """
    def row(v, fill):
        if v is None:
            return jnp.full((n_phys,), fill, jnp.float32)
        return _pad_vec(v, n_phys, fill)
    zeros = jnp.zeros((n_phys,), jnp.float32)
    return jnp.stack([row(sa, 1.0), row(ba, 0.0), row(sc, 1.0), row(bc, 0.0),
                      row(alpha, 0.0), zeros, zeros, zeros], axis=0)


def _epilogue(acc, epi, act):
    y = acc * epi[0:1] + epi[1:2]
    if act == "relu":
        y = jnp.maximum(y, 0.0)
    elif act == "prelu":
        y = jnp.where(y > 0, y, epi[4:5] * y)
    elif act == "leaky":
        y = jnp.where(y > 0, y, 0.01 * y)          # nn.LeakyReLU default slope
    return y * epi[2:3] + epi[3:4]


# -----------------------------------------------------------------------------
# Fused matmul + epilogue (im2col convs, 1x1 convs, linear, grouped head convs)
# -----------------------------------------------------------------------------

def _mm_kernel(a_ref, b_ref, epi_ref, o_ref, *, act):
    acc = jnp.dot(a_ref[...], b_ref[...], preferred_element_type=jnp.float32)
    o_ref[...] = _epilogue(acc, epi_ref[...], act).astype(o_ref.dtype)


@functools.partial(jax.jit, static_argnames=("act", "out_dtype"))
def _matmul_fused(a, b, epi, *, act, out_dtype):
    """out = act(a @ b * sa + ba)*sc + bc.

    b 2D (K,N): plain matmul, grid over M only (full weight resident in VMEM).
    b 3D (G,K,N): grouped matmul (per-group weights); a is (G,M,K) or (M,K)
    when all groups share the same A.
    """
    grouped = b.ndim == 3
    if grouped:
        g_cnt, k_dim, n_dim = b.shape
        shared_a = a.ndim == 2
    else:
        g_cnt, shared_a = 1, True
        k_dim, n_dim = b.shape
    m_dim = a.shape[-2]

    a = a.astype(jnp.bfloat16)
    b = b.astype(jnp.bfloat16)
    epi = epi.astype(jnp.float32)

    kp = _round_up(k_dim, 8)
    if kp != k_dim:
        a = jnp.pad(a, [(0, 0)] * (a.ndim - 1) + [(0, kp - k_dim)])
        b = jnp.pad(b, [(0, 0)] * (b.ndim - 2) + [(0, kp - k_dim), (0, 0)])
    mp = _round_up(m_dim, 8)
    tm = min(256, mp)
    mp = _round_up(mp, tm)
    if mp != m_dim:
        a = jnp.pad(a, [(0, 0)] * (a.ndim - 2) + [(0, mp - m_dim), (0, 0)])

    if not grouped:
        grid = (mp // tm,)
        in_specs = [pl.BlockSpec((tm, kp), lambda i: (i, 0)),
                    pl.BlockSpec((kp, n_dim), lambda i: (0, 0)),
                    pl.BlockSpec((8, n_dim), lambda i: (0, 0))]
        out_spec = pl.BlockSpec((tm, n_dim), lambda i: (i, 0))
        out_shape = jax.ShapeDtypeStruct((mp, n_dim), out_dtype)
        dims = ("parallel",)
        epi_arg = epi.reshape(8, n_dim)
    else:
        grid = (mp // tm, g_cnt)        # M first (long parallel axis), G inner
        if shared_a:
            a_spec = pl.BlockSpec((tm, kp), lambda i, g: (i, 0))
        else:
            a_spec = pl.BlockSpec((None, tm, kp), lambda i, g: (g, i, 0))
        in_specs = [a_spec,
                    pl.BlockSpec((None, kp, n_dim), lambda i, g: (g, 0, 0)),
                    pl.BlockSpec((None, 8, n_dim), lambda i, g: (g, 0, 0))]
        out_spec = pl.BlockSpec((None, tm, n_dim), lambda i, g: (g, i, 0))
        out_shape = jax.ShapeDtypeStruct((g_cnt, mp, n_dim), out_dtype)
        dims = ("parallel", "parallel")
        epi_arg = epi.reshape(g_cnt, 8, n_dim)

    out = pl.pallas_call(
        functools.partial(_mm_kernel, act=act),
        out_shape=out_shape,
        grid_spec=pltpu.PrefetchScalarGridSpec(
            num_scalar_prefetch=0, grid=grid,
            in_specs=in_specs, out_specs=out_spec),
        compiler_params=pltpu.CompilerParams(
            dimension_semantics=dims, vmem_limit_bytes=_VMEM_LIMIT),
    )(a, b, epi_arg)
    return out[:, :m_dim] if grouped else out[:m_dim]


# -----------------------------------------------------------------------------
# Direct 3x3 stride-1 conv kernel (no HBM im2col): 3 H-shifted slabs in,
# 9 taps built in VMEM, 9 accumulated MXU matmuls, fused epilogue.
# -----------------------------------------------------------------------------

def _conv3x3_kernel(a0_ref, a1_ref, a2_ref, w_ref, epi_ref, o_ref, *, act, wo):
    tr = o_ref.shape[0]
    c = a0_ref.shape[-1]
    cout = w_ref.shape[-1]
    acc = jnp.zeros((tr * wo, cout), jnp.float32)
    for ki, a_ref in enumerate((a0_ref, a1_ref, a2_ref)):
        a = a_ref[...]                                  # (tr, Wp, C)  bf16
        for kj in range(3):
            x = a[:, kj:kj + wo, :].reshape(tr * wo, c)
            acc = acc + jnp.dot(x, w_ref[ki * 3 + kj],
                                preferred_element_type=jnp.float32)
    y = _epilogue(acc, epi_ref[...], act)
    o_ref[...] = y.reshape(tr, wo, cout).astype(o_ref.dtype)


@functools.partial(jax.jit, static_argnames=("act",))
def _conv3x3_s1_call(x, w9, epi, *, act):
    n, h, wdt, c = x.shape
    cout = w9.shape[-1]
    xp = jnp.pad(x.astype(jnp.bfloat16), ((0, 0), (1, 1), (1, 1), (0, 0)))
    wp = wdt + 2
    # Three H-tap slabs (row ki of the padded image for output row i -> i+ki).
    slabs = [xp[:, ki:ki + h, :, :].reshape(n * h, wp, c) for ki in range(3)]
    m = n * h
    tr = 8
    budget = 14 * 1024 * 1024
    for cand in (256, 128, 64, 32, 16, 8):
        if m % cand:
            continue
        est = 4 * (3 * cand * wp * c + 3 * cand * wdt * cout) + 4 * 9 * c * cout
        if est <= budget:
            tr = cand
            break
    out = pl.pallas_call(
        functools.partial(_conv3x3_kernel, act=act, wo=wdt),
        out_shape=jax.ShapeDtypeStruct((m, wdt, cout), jnp.bfloat16),
        grid_spec=pltpu.PrefetchScalarGridSpec(
            num_scalar_prefetch=0,
            grid=(m // tr,),
            in_specs=[pl.BlockSpec((tr, wp, c), lambda i: (i, 0, 0)),
                      pl.BlockSpec((tr, wp, c), lambda i: (i, 0, 0)),
                      pl.BlockSpec((tr, wp, c), lambda i: (i, 0, 0)),
                      pl.BlockSpec((9, c, cout), lambda i: (0, 0, 0)),
                      pl.BlockSpec((8, cout), lambda i: (0, 0))],
            out_specs=pl.BlockSpec((tr, wdt, cout), lambda i: (i, 0, 0))),
        compiler_params=pltpu.CompilerParams(
            dimension_semantics=("parallel",), vmem_limit_bytes=_VMEM_LIMIT),
    )(slabs[0], slabs[1], slabs[2], w9.astype(jnp.bfloat16),
      epi.astype(jnp.float32))
    return out.reshape(n, h, wdt, cout)


# -----------------------------------------------------------------------------
# Per-channel affine kernel (the pre-conv BatchNorm that cannot fold into conv)
# -----------------------------------------------------------------------------

def _affine_kernel(x_ref, s_ref, b_ref, o_ref):
    o_ref[...] = (x_ref[...].astype(jnp.float32) * s_ref[...]
                  + b_ref[...]).astype(o_ref.dtype)


@jax.jit
def _affine_call(x2, s, b):
    rows, c = x2.shape
    tr = rows
    for t in (4096, 2048, 1024, 512, 256, 128, 64, 32, 16, 8):
        if rows % t == 0 and t * c * 2 <= 2 * 1024 * 1024:
            tr = t
            break
    return pl.pallas_call(
        _affine_kernel,
        out_shape=jax.ShapeDtypeStruct((rows, c), jnp.bfloat16),
        grid_spec=pltpu.PrefetchScalarGridSpec(
            num_scalar_prefetch=0,
            grid=(rows // tr,),
            in_specs=[pl.BlockSpec((tr, c), lambda i: (i, 0)),
                      pl.BlockSpec((1, c), lambda i: (0, 0)),
                      pl.BlockSpec((1, c), lambda i: (0, 0))],
            out_specs=pl.BlockSpec((tr, c), lambda i: (i, 0))),
        compiler_params=pltpu.CompilerParams(
            dimension_semantics=("parallel",)),
    )(x2, s.reshape(1, c), b.reshape(1, c))


def apply_affine(x, scale, shift):
    c = x.shape[-1]
    scale = _pad_vec(scale, c, 1.0)
    shift = _pad_vec(shift, c, 0.0)
    y = _affine_call(x.astype(jnp.bfloat16).reshape(-1, c), scale, shift)
    return y.reshape(x.shape)


# -----------------------------------------------------------------------------
# Fused SEModule + residual-add kernel (bf16 in/out, f32 gate math)
# -----------------------------------------------------------------------------

def _se_residual_kernel(h_ref, sc_ref, w1_ref, w2_ref, o_ref):
    h = h_ref[...].astype(jnp.float32)                      # (N, HW, C)
    s = jnp.sum(h, axis=1) * (1.0 / h.shape[1])             # global avg pool
    z = jnp.maximum(jnp.dot(s, w1_ref[...],
                            preferred_element_type=jnp.float32), 0.0)
    g = jnp.dot(z, w2_ref[...], preferred_element_type=jnp.float32)
    g = 1.0 / (1.0 + jnp.exp(-g))                           # sigmoid gate
    o_ref[...] = (h * g[:, None, :]
                  + sc_ref[...].astype(jnp.float32)).astype(o_ref.dtype)


@jax.jit
def _se_residual_call(h3, sc3, w1, w2):
    return pl.pallas_call(
        _se_residual_kernel,
        out_shape=jax.ShapeDtypeStruct(h3.shape, jnp.bfloat16),
    )(h3, sc3, w1, w2)


def se_residual(h, shortcut, p):
    n, hh, ww, c = h.shape
    c_l, r = p["w1"].shape
    rp = max(128, _round_up(r, 128))
    w1 = jnp.pad(jnp.asarray(p["w1"], jnp.float32), ((0, c - c_l), (0, rp - r)))
    w2 = jnp.pad(jnp.asarray(p["w2"], jnp.float32), ((0, rp - r), (0, c - c_l)))
    out = _se_residual_call(
        h.astype(jnp.bfloat16).reshape(n, hh * ww, c),
        shortcut.astype(jnp.bfloat16).reshape(n, hh * ww, c), w1, w2)
    return out.reshape(h.shape)


# -----------------------------------------------------------------------------
# Fused bilinear-upsample (align_corners=True) + add kernel
# -----------------------------------------------------------------------------

def _upsample_add_kernel(xg_ref, wg_ref, y_ref, o_ref):
    acc = y_ref[...].astype(jnp.float32)
    for k in range(4):                                      # 4 bilinear taps
        acc = acc + xg_ref[k].astype(jnp.float32) * wg_ref[k]
    o_ref[...] = acc.astype(o_ref.dtype)


@jax.jit
def _upsample_add_call(xg, wg, y2):
    return pl.pallas_call(
        _upsample_add_kernel,
        out_shape=jax.ShapeDtypeStruct(y2.shape, jnp.bfloat16),
    )(xg, wg, y2)


def _interp_taps(out_size, in_size):
    if in_size == 1:
        lo = np.zeros(out_size, np.int64)
        return lo, lo.copy(), np.zeros(out_size, np.float32)
    if out_size == 1:
        src = np.zeros(out_size, np.float64)
    else:
        src = np.arange(out_size) * (in_size - 1) / (out_size - 1)
    lo = np.floor(src).astype(np.int64)
    hi = np.minimum(lo + 1, in_size - 1)
    fr = (src - lo).astype(np.float32)
    return lo, hi, fr


def upsample_add(x, y):
    """bilinear_upsample(x -> y's size, align_corners=True) + y."""
    n, h, w, c = x.shape
    _, hh, ww, _ = y.shape
    lo_h, hi_h, fh = _interp_taps(hh, h)
    lo_w, hi_w, fw = _interp_taps(ww, w)
    xb = x.astype(jnp.bfloat16)
    xl, xh = xb[:, lo_h], xb[:, hi_h]                       # static corner gathers
    corners = [xl[:, :, lo_w], xl[:, :, hi_w], xh[:, :, lo_w], xh[:, :, hi_w]]
    w_sp = np.stack([np.outer(1 - fh, 1 - fw), np.outer(1 - fh, fw),
                     np.outer(fh, 1 - fw), np.outer(fh, fw)], 0)
    rows = n * hh * ww
    xg = jnp.stack(corners, axis=0).reshape(4, rows, c)
    wg = jnp.asarray(np.tile(w_sp.reshape(4, hh * ww).astype(np.float32),
                             (1, n)).reshape(4, rows, 1))
    out = _upsample_add_call(xg, wg, y.astype(jnp.bfloat16).reshape(rows, c))
    return out.reshape(n, hh, ww, c)


# -----------------------------------------------------------------------------
# Conv / module forward functions (glue in plain JAX, compute in Pallas)
# -----------------------------------------------------------------------------

def im2col(x, kh, kw, stride, pad):
    n, h, w, c = x.shape
    if kh == 1 and kw == 1 and pad == 0:
        if stride > 1:
            x = x[:, ::stride, ::stride, :]
        return x, x.shape[1], x.shape[2]
    xp = jnp.pad(x, ((0, 0), (pad, pad), (pad, pad), (0, 0))) if pad else x
    ho = (h + 2 * pad - kh) // stride + 1
    wo = (w + 2 * pad - kw) // stride + 1
    cols = [xp[:, ki:ki + stride * ho:stride, kj:kj + stride * wo:stride, :]
            for ki in range(kh) for kj in range(kw)]
    return jnp.concatenate(cols, axis=-1), ho, wo


def conv2d(x, w, stride, padding, epi, act):
    kh, kw, cin, cout = w.shape
    cin_phys = x.shape[-1]
    cout_phys = _phys(cout)
    wf = jnp.asarray(w, jnp.float32)
    if cin_phys != cin or cout_phys != cout:
        wf = jnp.pad(wf, ((0, 0), (0, 0),
                          (0, cin_phys - cin), (0, cout_phys - cout)))
    n, h, wdt, _ = x.shape
    if (kh == 3 and kw == 3 and stride == 1 and padding == 1
            and cin_phys % 128 == 0 and wdt % 8 == 0 and (n * h) % 8 == 0):
        return _conv3x3_s1_call(x.astype(jnp.bfloat16),
                                wf.reshape(9, cin_phys, cout_phys), epi, act=act)
    patches, ho, wo = im2col(x.astype(jnp.bfloat16), kh, kw, stride, padding)
    y = _matmul_fused(patches.reshape(n * ho * wo, kh * kw * cin_phys),
                      wf.reshape(kh * kw * cin_phys, cout_phys), epi,
                      act=act, out_dtype=jnp.bfloat16)
    return y.reshape(n, ho, wo, cout_phys)


def bn_scale_shift(p, eps=1e-5):
    scale = p["gamma"] / jnp.sqrt(p["var"] + eps)
    shift = p["beta"] - p["mean"] * scale
    return scale, shift


def resnet_block(x, p):
    stride = p["stride"]
    cout_l = p["conv1"]["w"].shape[3]
    cout_p = _phys(cout_l)
    # shortcut branch
    if "sc_conv" in p:                                    # Conv1x1(stride) + BN
        s, sh = bn_scale_shift(p["sc_bn"])
        epi_sc = make_epi(cout_p, ba=p["sc_conv"]["b"], sc=s, bc=sh)
        sc = conv2d(x, p["sc_conv"]["w"], stride, 0, epi_sc, "none")
    else:                                                 # MaxPool2d(1, stride)
        sc = x[:, ::stride, ::stride, :]
    # main branch: BN1 -> conv3x3 [+bias, PReLU, BN2 fused] -> conv3x3 [+bias, BN3]
    s1, sh1 = bn_scale_shift(p["bn1"])
    h = apply_affine(x, s1, sh1)
    s2, sh2 = bn_scale_shift(p["bn2"])
    epi1 = make_epi(cout_p, ba=p["conv1"]["b"], alpha=p["prelu"], sc=s2, bc=sh2)
    h = conv2d(h, p["conv1"]["w"], 1, 1, epi1, "prelu")
    s3, sh3 = bn_scale_shift(p["bn3"])
    epi2 = make_epi(cout_p, ba=p["conv2"]["b"], sc=s3, bc=sh3)
    h = conv2d(h, p["conv2"]["w"], stride, 1, epi2, "none")
    # SE scaling + residual add, fused
    return se_residual(h, sc, p["se"])


def tostyle_stage(x, heads):
    """Run all heads of one pyramid level as grouped Pallas matmuls."""
    nh = len(heads)
    n = x.shape[0]
    n_convs = len(heads[0]["convs"])
    y = x
    for d in range(n_convs):
        ws = jnp.stack([jnp.asarray(h["convs"][d]["w"], jnp.float32)
                        for h in heads], 0)               # (nh, 3, 3, cin, cout)
        kh, kw, cin, cout = ws.shape[1:]
        epi = jnp.stack([make_epi(cout, ba=h["convs"][d]["b"]) for h in heads], 0)
        if d == 0:                                        # shared input activation
            patches, ho, wo = im2col(y.astype(jnp.bfloat16), kh, kw, 2, 1)
            a = patches.reshape(n * ho * wo, kh * kw * cin)
        else:                                             # per-head activations
            patches, ho, wo = im2col(y.astype(jnp.bfloat16), kh, kw, 2, 1)
            a = patches.reshape(nh, n * ho * wo, kh * kw * cin)
        b3 = ws.reshape(nh, kh * kw * cin, cout)
        out = _matmul_fused(a, b3, epi, act="leaky", out_dtype=jnp.bfloat16)
        y = out.reshape(nh * n, ho, wo, cout)
    feats = y.reshape(nh, n, -1)                          # spatial is 1x1 now
    # EqualLinear (lr_mult=1): y = x @ (W / sqrt(in)).T + b
    lw = jnp.stack([(jnp.asarray(h["lin_w"], jnp.float32)
                     * (1.0 / math.sqrt(h["lin_w"].shape[1]))).T
                    for h in heads], 0)                   # (nh, 512, 512)
    epi = jnp.stack([make_epi(lw.shape[-1], ba=h["lin_b"]) for h in heads], 0)
    lat = _matmul_fused(feats, lw, epi, act="none", out_dtype=jnp.float32)
    return jnp.transpose(lat, (1, 0, 2))                  # (n, nh, 512)


def encoder_forward(params, x_nchw):
    x = jnp.transpose(x_nchw, (0, 2, 3, 1)).astype(jnp.bfloat16)  # NCHW -> NHWC
    # input layer: conv(bias=False) with fused BN + PReLU epilogue
    s, sh = bn_scale_shift(params["input_bn"])
    epi = make_epi(_phys(64), sa=s, ba=sh, alpha=params["input_prelu"])
    x = conv2d(x, params["input_conv"]["w"], 1, 1, epi, "prelu")
    # ResNet backbone
    h = x
    for blk in params["block_128"]:
        h = resnet_block(h, blk)
    for blk in params["block_64"]:
        h = resnet_block(h, blk)
    feature_64 = h
    for blk in params["block_32"]:
        h = resnet_block(h, blk)
    feature_32 = h
    for blk in params["block_16"]:
        h = resnet_block(h, blk)
    feature_16 = h
    # feature pyramid -> style vectors (heads batched per level)
    latents = [tostyle_stage(feature_16, params["coarse"])]
    lat32 = conv2d(feature_32, params["lateral_32"]["w"], 1, 0,
                   make_epi(512, ba=params["lateral_32"]["b"]), "none")
    combined_32 = upsample_add(feature_16, lat32)
    latents.append(tostyle_stage(combined_32, params["mid"]))
    lat64 = conv2d(feature_64, params["lateral_64"]["w"], 1, 0,
                   make_epi(512, ba=params["lateral_64"]["b"]), "none")
    combined_64 = upsample_add(combined_32, lat64)
    latents.append(tostyle_stage(combined_64, params["fine"]))
    return jnp.concatenate(latents, axis=1)               # (N, n_styles, 512)


# -----------------------------------------------------------------------------
# Deterministic synthetic parameter initialization
# -----------------------------------------------------------------------------

class ParamGen:
    def __init__(self, seed=0):
        self.rng = np.random.default_rng(seed)

    def normal(self, shape, scale=0.05):
        return jnp.asarray(self.rng.normal(0.0, scale, size=shape)
                           .astype(np.float32))


def init_conv(pg, cin, cout, k, bias=True):
    fan_in = k * k * cin
    p = {"w": pg.normal((k, k, cin, cout), scale=1.0 / math.sqrt(fan_in))}
    p["b"] = pg.normal((cout,), 0.01) if bias else None
    return p


def init_bn(pg, c):
    return {"gamma": 1.0 + pg.normal((c,), 0.05),
            "beta": pg.normal((c,), 0.05),
            "mean": pg.normal((c,), 0.05),
            "var": 1.0 + jnp.abs(pg.normal((c,), 0.05))}


def init_resnet_block(pg, cin, cout, stride):
    p = {"stride": stride,
         "bn1": init_bn(pg, cin),
         "conv1": init_conv(pg, cin, cout, 3, bias=True),
         "prelu": 0.25 + pg.normal((cout,), 0.02),
         "bn2": init_bn(pg, cout),
         "conv2": init_conv(pg, cout, cout, 3, bias=True),
         "bn3": init_bn(pg, cout),
         "se": {"w1": pg.normal((cout, cout // 16), scale=1.0 / math.sqrt(cout)),
                "w2": pg.normal((cout // 16, cout),
                                scale=1.0 / math.sqrt(cout // 16))}}
    if cin != cout:
        p["sc_conv"] = init_conv(pg, cin, cout, 1, bias=True)
        p["sc_bn"] = init_bn(pg, cout)
    return p


def init_downsample_block(pg, cin, cout, n_layers, down_factor=2):
    blocks = [init_resnet_block(pg, cin, cout, down_factor)]
    blocks += [init_resnet_block(pg, cout, cout, 1) for _ in range(n_layers - 1)]
    return blocks


def init_tostyle(pg, cin, cout, resolution):
    n_convs = 1 + (int(np.log2(resolution)) - 1)
    convs = [init_conv(pg, cin, cout, 3, bias=True)]
    convs += [init_conv(pg, cout, cout, 3, bias=True) for _ in range(n_convs - 1)]
    return {"convs": convs,
            "lin_w": pg.normal((cout, cout), scale=1.0),     # EqualLinear weight
            "lin_b": pg.normal((cout,), 0.01)}


def init_encoder(pg, in_channel, resolution):
    n_fine = int(math.log(resolution, 2)) * 2 - 2 - 7
    return {
        "input_conv": init_conv(pg, in_channel, 64, 3, bias=False),
        "input_bn": init_bn(pg, 64),
        "input_prelu": 0.25 + pg.normal((64,), 0.02),
        "block_128": init_downsample_block(pg, 64, 64, 3),
        "block_64": init_downsample_block(pg, 64, 128, 4),
        "block_32": init_downsample_block(pg, 128, 256, 14),
        "block_16": init_downsample_block(pg, 256, 512, 3),
        "coarse": [init_tostyle(pg, 512, 512, 16) for _ in range(3)],
        "mid": [init_tostyle(pg, 512, 512, 32) for _ in range(4)],
        "fine": [init_tostyle(pg, 512, 512, 64) for _ in range(n_fine)],
        "lateral_32": init_conv(pg, 256, 512, 1, bias=True),
        "lateral_64": init_conv(pg, 128, 512, 1, bias=True),
    }


# -----------------------------------------------------------------------------
# Main
# -----------------------------------------------------------------------------

if __name__ == "__main__":
    IN_CHANNEL = 3
    RESOLUTION = 256      # StyleGAN resolution arg -> 3 coarse + 4 mid + 7 fine

    pg = ParamGen(seed=0)
    params = init_encoder(pg, IN_CHANNEL, RESOLUTION)

    key = jax.random.PRNGKey(0)
    # Small input (NCHW, like the PyTorch module): batch=2, 3x64x64 image.
    x = jax.random.normal(key, (2, IN_CHANNEL, 64, 64), dtype=jnp.float32)

    out = encoder_forward(params, x)
    out = jax.block_until_ready(out)

    n_styles = 3 + 4 + (int(math.log(RESOLUTION, 2)) * 2 - 2 - 7)
    assert out.shape == (2, n_styles, 512), out.shape
    assert bool(jnp.all(jnp.isfinite(out)))
    print("KERNEL_OK")
</pallas_src>

<mosaic_0001>
module attributes {stable_mosaic.version = 11 : i64} {
  func.func @_mm_kernel(%arg0: i32, %arg1: memref<256x32xbf16, #tpu.memory_space<vmem>>, %arg2: memref<32x128xbf16, #tpu.memory_space<vmem>>, %arg3: memref<8x128xf32, #tpu.memory_space<vmem>>, %arg4: memref<256x128xbf16, #tpu.memory_space<vmem>>) attributes {dimension_semantics = [#tpu.dimension_semantics<parallel>], iteration_bounds = array<i64: 32>, scalar_prefetch = 0 : i64, scratch_operands = 0 : i64, tpu.core_type = #tpu.core_type<tc>, window_params = [{transform_indices = @transform_0, window_bounds = array<i64: 256, 32>}, {pipeline_mode = #tpu.pipeline_mode<synchronous>, transform_indices = @transform_1, window_bounds = array<i64: 32, 128>}, {pipeline_mode = #tpu.pipeline_mode<synchronous>, transform_indices = @transform_2, window_bounds = array<i64: 8, 128>}, {transform_indices = @transform_3, window_bounds = array<i64: 256, 128>}]} {
    %c0 = arith.constant 0 : index
    %c0_0 = arith.constant 0 : index
    %0 = vector.load %arg1[%c0, %c0_0] : memref<256x32xbf16, #tpu.memory_space<vmem>>, vector<256x32xbf16>
    %c0_1 = arith.constant 0 : index
    %c0_2 = arith.constant 0 : index
    %1 = vector.load %arg2[%c0_1, %c0_2] : memref<32x128xbf16, #tpu.memory_space<vmem>>, vector<32x128xbf16>
    %cst = arith.constant dense<0.000000e+00> : vector<256x128xf32>
    %2 = tpu.matmul %0, %1, %cst {dimension_numbers = #tpu.dot_dimension_numbers<[1], [0], [0], [1], [0, 0, 1, 1], [], []>} : vector<256x32xbf16>, vector<32x128xbf16>, vector<256x128xf32> -> vector<256x128xf32>
    %c0_3 = arith.constant 0 : index
    %c0_4 = arith.constant 0 : index
    %3 = vector.load %arg3[%c0_3, %c0_4] : memref<8x128xf32, #tpu.memory_space<vmem>>, vector<8x128xf32>
    %4 = vector.extract_strided_slice %3 {offsets = [0, 0], sizes = [1, 128], strides = [1, 1]} : vector<8x128xf32> to vector<1x128xf32>
    %5 = vector.broadcast %4 : vector<1x128xf32> to vector<256x128xf32>
    %6 = arith.mulf %2, %5 : vector<256x128xf32>
    %7 = vector.extract_strided_slice %3 {offsets = [1, 0], sizes = [1, 128], strides = [1, 1]} : vector<8x128xf32> to vector<1x128xf32>
    %8 = vector.broadcast %7 : vector<1x128xf32> to vector<256x128xf32>
    %9 = arith.addf %6, %8 : vector<256x128xf32>
    %cst_5 = arith.constant 0.000000e+00 : f32
    %10 = vector.broadcast %cst_5 : f32 to vector<256x128xf32>
    %11 = arith.cmpf ogt, %9, %10 : vector<256x128xf32>
    %12 = vector.extract_strided_slice %3 {offsets = [4, 0], sizes = [1, 128], strides = [1, 1]} : vector<8x128xf32> to vector<1x128xf32>
    %13 = vector.broadcast %12 : vector<1x128xf32> to vector<256x128xf32>
    %14 = arith.mulf %13, %9 : vector<256x128xf32>
    %15 = arith.select %11, %9, %14 : vector<256x128xi1>, vector<256x128xf32>
    %16 = vector.extract_strided_slice %3 {offsets = [2, 0], sizes = [1, 128], strides = [1, 1]} : vector<8x128xf32> to vector<1x128xf32>
    %17 = vector.broadcast %16 : vector<1x128xf32> to vector<256x128xf32>
    %18 = arith.mulf %15, %17 : vector<256x128xf32>
    %19 = vector.extract_strided_slice %3 {offsets = [3, 0], sizes = [1, 128], strides = [1, 1]} : vector<8x128xf32> to vector<1x128xf32>
    %20 = vector.broadcast %19 : vector<1x128xf32> to vector<256x128xf32>
    %21 = arith.addf %18, %20 : vector<256x128xf32>
    %22 = arith.truncf %21 : vector<256x128xf32> to vector<256x128xbf16>
    %c0_6 = arith.constant 0 : index
    %c0_7 = arith.constant 0 : index
    %23 = vector.load %arg4[%c0_6, %c0_7] : memref<256x128xbf16, #tpu.memory_space<vmem>>, vector<256x128xbf16>
    tpu.vector_store %arg4[%c0_6, %c0_7], %22 {strides = array<i32>} : memref<256x128xbf16, #tpu.memory_space<vmem>>, vector<256x128xbf16>,
    return
  }
  func.func @transform_0(%arg0: i32) -> (i32, i32) {
    %c0_i32 = arith.constant 0 : i32
    %c0_i32_0 = arith.constant 0 : i32
    return %arg0, %c0_i32 : i32, i32
  }
  func.func @transform_1(%arg0: i32) -> (i32, i32) {
    %c0_i32 = arith.constant 0 : i32
    %c0_i32_0 = arith.constant 0 : i32
    %c0_i32_1 = arith.constant 0 : i32
    return %c0_i32, %c0_i32_0 : i32, i32
  }
  func.func @transform_2(%arg0: i32) -> (i32, i32) {
    %c0_i32 = arith.constant 0 : i32
    %c0_i32_0 = arith.constant 0 : i32
    %c0_i32_1 = arith.constant 0 : i32
    return %c0_i32, %c0_i32_0 : i32, i32
  }
  func.func @transform_3(%arg0: i32) -> (i32, i32) {
    %c0_i32 = arith.constant 0 : i32
    %c0_i32_0 = arith.constant 0 : i32
    return %arg0, %c0_i32 : i32, i32
  }
}

</mosaic_0001>

<bundles_post_ra>
// kernel: _matmul_fused.1
= control target key start
LH: loop header
LB: loop body
LE: loop exit
PB: predicated region body
PF: predicated region fallthrough
CT: control target
= control target key end

     0   :  { %8 = vsyncpa [#allocation3], 0  ;;  %s1738_s0 = inlined_call_operand.vmem [shape: bf16[8192,32], index: 0, kind: input, shape index: {}]   ;;  %s1739_s1 = inlined_call_operand.vmem [shape: bf16[32,128], index: 1, kind: input, shape index: {}]   ;;  %s1740_s2 = inlined_call_operand.vmem [shape: f32[8,128], index: 2, kind: input, shape index: {}]   ;;  %s1741_s3 = inlined_call_operand.hbm [shape: bf16[8192,128], index: 3, kind: output, shape index: {}]  }
   0x1   :  { %10 = vsyncpa [#allocation3 + $0x1], 0  ;;  %s1400_s12 = smov 0   ;;  %s1402_s13 = smov 0  }
   0x2   :  { %s1404_s14 = smov 0   ;;  %s1406_s15 = smov 0  }
   0x3 LB: > { %s1421_s16 = sadd.s32 4294967295, %s1375_s15   ;;  %s992_s17 = sadd.s32 4294967294, %s1375_s15   ;;  %s1375_s15 = sphi %s1406_s15, %s1747_s15   ;;  %s1371_s14 = sphi %s1404_s14, %s1746_s14   ;;  %s1367_s13 = sphi %s1402_s13, %s1745_s13   ;;  %s1363_s12 = sphi %s1400_s12, %s1744_s12  }
   0x4   : > { %s1425_s18 = sadd.s32 1, %s1375_s15   ;;  %s91_s19 = sadd.s32 1, %s1371_s14 }
   0x5   : > { %s88_s20 = ssub.s32 %s1375_s15, %s1425_s18  ;;  %p101_p0 = scmp.ne.s32.totalorder %s1371_s14, %s1367_s13 }
   0x6   : > { %p89_p1 = scmp.eq.s32.totalorder %s88_s20, 0  ;;  %p102_p2 = scmp.eq.s32.totalorder %s1421_s16, 31 }
   0x7   : > { %p107_p3 = scmp.ne.s32.totalorder %s1367_s13, %s1363_s12  ;;  %p108_p4 = scmp.eq.s32.totalorder %s992_s17, 31 }
   0x8   : > { %s1436_s21 = scalar_select %p89_p1, %s1371_s14, %s91_s19  }
   0x9   : > { %p1438_p5 = por %p102_p2, %p101_p0  ;;  %p1442_p6 = por %p108_p4, %p107_p3 }
   0xa   : > { %p995_p7 = scmp.ge.s32.totalorder %s1375_s15, 1  ;;  %p141_p8 = scmp.lt.s32.totalorder %s1375_s15, 33 }
   0xc   : > { %p142_p9 = pnand %p995_p7, %p141_p8 }
   0xd   : > { %s997_s26 = sshll.u32 (!%p142_p9), %s1421_s16, 5  ;;  %s162_s8 = sand.u32 (!%p142_p9), 1, %s1367_s13  }
   0xe   : > { %145 = sbr.rel (%p142_p9) target bundleno = 302 (0x12e), region = 32  ;;  %p166_p10 = scmp.lt.s32.totalorder (!%p142_p9), %s997_s26, 1023 }
   0xf   : > { %s996_s9 = sshll.u32 (!%p142_p9), %s162_s8, 7  ;;  %s1102_s11 = sshll.u32 (!%p142_p9), %s1421_s16, 11 }
  0x10   : > { %s1550_s10 = scalar_lea.vmem (!%p142_p9), [#allocation2], %s996_s9  ;;  %s1690_s24 = scalar_lea.hbm (!%p142_p9), %s1741_s3, %s1102_s11 }
  0x11   : > { %s930_s17 = sshll.u32 (!%p142_p9), %s1550_s10, 4  ;;  %s1698_s16 = scalar_lea.sflag (!%p142_p9), [#allocation3], %s162_s8  ;;  %s1692_s17 = int_to_ptr.vmem [resolvable:$true] %s930_s17 }
  0x12   : > { %s1315_s25 = scalar_lea.vmem (!%p142_p9), %s1692_s17, 2048 }
  0x13   : > { %v1297_v0 = vld [vmem:[%s1739_s1 + $0x8] sm:$0xff]   ;;  %v1298_v1 = vld [vmem:[%s1739_s1] sm:$0xff]   ;;  %s1749_s26 = smov (!%p166_p10, %s997_s26), 1023  ;;  %vm301_vm0 = vcmask 261120   ;;  %v512_v18 = vlaneseq  ;;  %p1316_p11 = scmp.ne.s32.totalorder %s1692_s17, %s1315_s25 }
  0x14   : > { %1216 = vmatprep.subr.bf16.mxu0 %v1297_v0  ;;  %1252 = vmatprep.subr.bf16.mxu1 %v1297_v0  ;;  %s998_s29 = sshll.u32 %s1749_s26, 2  ;;  %v511_v21 = vld [vmem:[%s1740_s2] sm:$0xff]  ;;  %s1377_s26 = smov [#allocation2]  }
  0x15   : > { %1217 = vmatpush3.bf16.msra.mxu0 %v1297_v0  ;;  %1254 = vmatpush3.bf16.msra.mxu1 %v1297_v0  ;;  %s1458_s5 = scalar_lea.vmem %s1738_s0, %s998_s29  ;;  %v513_v19 = vshrl.u32 %v512_v18, 7  ;;  %p1317_p12 = pnand %p1316_p11, %p1438_p5 }
  0x16   : > { %1218 = vmatprep.subr.bf16.mxu0 %v1298_v1  ;;  %1253 = vmatprep.subr.bf16.mxu1 %v1298_v1  ;;  %v1299_v2 = vld [vmem:[%s1458_s5] sm:$0xff]   ;;  %v1301_v4 = vld [vmem:[%s1458_s5 + $0x8] sm:$0xff]   ;;  %v1303_v6 = vld [vmem:[%s1458_s5 + $0x10] sm:$0xff]   ;;  %s1319_s27 = sshll.u32 %s1377_s26, 4  ;;  %s1320_s27 = int_to_ptr.vmem [resolvable:$false] %s1319_s27 }
  0x17   : > { %v1300_v3 = vld [vmem:[%s1458_s5 + $0x40] sm:$0xff]   ;;  %1220 = vmatprep.mubr.msk.bf16.mxu0 %vm301_vm0, %v1299_v2  ;;  %v1302_v5 = vld [vmem:[%s1458_s5 + $0x48] sm:$0xff]   ;;  %v1304_v7 = vld [vmem:[%s1458_s5 + $0x50] sm:$0xff]   ;;  %v514_v20 = vsub.s32 0, %v513_v19  ;;  %v550_v22 = vsub.s32 1, %v513_v19  ;;  %v618_v24 = vsub.s32 4, %v513_v19  ;;  %p1318_p13 = pneg %p1317_p12  ;;  %p1322_p0 = scmp.lt.s32.totalorder %s1692_s17, %s1320_s27 }
  0x18   : > { %1236 = vmatprep.mubr.msk.bf16.mxu1 %vm301_vm0, %v1300_v3  ;;  %v1305_v8 = vld [vmem:[%s1458_s5 + $0x18] sm:$0xff]   ;;  %v1307_v10 = vld [vmem:[%s1458_s5 + $0x20] sm:$0xff]   ;;  %v1309_v12 = vld [vmem:[%s1458_s5 + $0x28] sm:$0xff]   ;;  %v686_v27 = vsub.s32 2, %v513_v19  ;;  %v722_v28 = vsub.s32 3, %v513_v19  ;;  %s1321_s28 = scalar_lea.vmem %s1320_s27, 4096 }
  0x19   : > { %1219 = vmatpush3.bf16.msra.mxu0 %v1298_v1  ;;  %1255 = vmatpush3.bf16.msra.mxu1 %v1298_v1  ;;  %v1306_v9 = vld [vmem:[%s1458_s5 + $0x58] sm:$0xff]   ;;  %v1308_v11 = vld [vmem:[%s1458_s5 + $0x60] sm:$0xff]   ;;  %v1310_v13 = vld [vmem:[%s1458_s5 + $0x68] sm:$0xff]   ;;  %v1495_v23 = vrot.slane %v511_v21, %v514_v20  ;;  %v1497_v25 = vrot.slane %v511_v21, %v550_v22  ;;  %v1500_v30 = vrot.slane %v511_v21, %v618_v24  ;;  %p1323_p1 = scmp.lt.s32.totalorder %s1321_s28, %s1315_s25 }
  0x1a   : > { %v1311_v14 = vld [vmem:[%s1458_s5 + $0x30] sm:$0xff]   ;;  %v1313_v16 = vld [vmem:[%s1458_s5 + $0x38] sm:$0xff]   ;;  %v1505_v37 = vrot.slane %v511_v21, %v686_v27  ;;  %v1507_v38 = vrot.slane %v511_v21, %v722_v28 }
  0x1b   : > { %v1312_v15 = vld [vmem:[%s1458_s5 + $0x70] sm:$0xff]   ;;  %v1314_v17 = vld [vmem:[%s1458_s5 + $0x78] sm:$0xff]   ;;  %p1324_p2 = por %p1323_p1, %p1322_p0 }
  0x1c   : > { %1221 = vmatmul.mubr.msk.bf16.vlgmr.msra.gmra.mxu0 %vm301_vm0, %v1301_v4  ;;  %1237 = vmatmul.mubr.msk.bf16.vlgmr.msra.gmra.mxu1 %vm301_vm0, %v1302_v5 }
  0x1d   : > { %1224 = vmatprep.mubr.msk.bf16.mxu0 %vm301_vm0, %v1303_v6  ;;  %1240 = vmatprep.mubr.msk.bf16.mxu1 %vm301_vm0, %v1304_v7  ;;  %p1325_p3 = pnand %p1324_p2, %p1318_p13 }
  0x24   : > { %1225 = vmatmul.mubr.msk.bf16.gmra.mxu0 %vm301_vm0, %v1305_v8  ;;  %1241 = vmatmul.mubr.msk.bf16.gmra.mxu1 %vm301_vm0, %v1306_v9 }
  0x25   : > { %1228 = vmatprep.mubr.msk.bf16.mxu0 %vm301_vm0, %v1307_v10  ;;  %1244 = vmatprep.mubr.msk.bf16.mxu1 %vm301_vm0, %v1308_v11 }
  0x2c   : > { %1229 = vmatmul.mubr.msk.bf16.gmra.mxu0 %vm301_vm0, %v1309_v12  ;;  %1245 = vmatmul.mubr.msk.bf16.gmra.mxu1 %vm301_vm0, %v1310_v13 }
  0x2d   : > { %1232 = vmatprep.mubr.msk.bf16.mxu0 %vm301_vm0, %v1311_v14  ;;  %1248 = vmatprep.mubr.msk.bf16.mxu1 %vm301_vm0, %v1312_v15 }
  0x34   : > { %1233 = vmatmul.mubr.msk.bf16.gmra.mxu0 %vm301_vm0, %v1313_v16  ;;  %1249 = vmatmul.mubr.msk.bf16.gmra.mxu1 %vm301_vm0, %v1314_v17 }
  0xdc   : > { %v1222_v26 = vpop.f32.mrf.mxu0  ;;  %v1238_v31 = vpop.f32.mrf.mxu1 }
  0xdd   : > { %v518_v29 = vmul.f32 %v1222_v26, %v1495_v23  ;;  %v534_v32 = vmul.f32 %v1238_v31, %v1495_v23 }
  0xde   : > { %v384_v33 = vpop.f32.mrf.mxu0  ;;  %v448_v36 = vpop.f32.mrf.mxu1 }
  0xdf   : > { %v554_v34 = vadd.f32 %v1497_v25, %v518_v29  ;;  %v516_v35 = vmul.f32 %v1495_v23, %v384_v33  ;;  %v570_v39 = vadd.f32 %v1497_v25, %v534_v32  ;;  %v532_v40 = vmul.f32 %v1495_v23, %v448_v36 }
  0xe0   : > { %v1223_v41 = vpop.f32.mrf.mxu0  ;;  %v1239_v45 = vpop.f32.mrf.mxu1 }
  0xe1   : > { %vm586_vm1 = vcmp.gt.f32.partialorder %v554_v34, 0.0  ;;  %v622_v42 = vmul.f32 %v1500_v30, %v554_v34  ;;  %v552_v43 = vadd.f32 %v1497_v25, %v516_v35  ;;  %v519_v44 = vmul.f32 %v1223_v41, %v1495_v23 }
  0xe2   : > { %vm602_vm2 = vcmp.gt.f32.partialorder %v570_v39, 0.0  ;;  %v638_v46 = vmul.f32 %v1500_v30, %v570_v39  ;;  %v568_v47 = vadd.f32 %v1497_v25, %v532_v40  ;;  %v535_v48 = vmul.f32 %v1239_v45, %v1495_v23  ;;  %v387_v49 = vpop.f32.mrf.mxu0  ;;  %v451_v53 = vpop.f32.mrf.mxu1 }
  0xe3   : > { %v654_v50 = vsel %vm586_vm1, %v554_v34, %v622_v42  ;;  %vm584_vm3 = vcmp.gt.f32.partialorder %v552_v43, 0.0  ;;  %v620_v51 = vmul.f32 %v1500_v30, %v552_v43  ;;  %v555_v52 = vadd.f32 %v1497_v25, %v519_v44 }
  0xe4   : > { %v690_v54 = vmul.f32 %v1505_v37, %v654_v50  ;;  %v670_v55 = vsel %vm602_vm2, %v570_v39, %v638_v46  ;;  %vm600_vm4 = vcmp.gt.f32.partialorder %v568_v47, 0.0  ;;  %v636_v56 = vmul.f32 %v1500_v30, %v568_v47  ;;  %v1226_v57 = vpop.f32.mrf.mxu0  ;;  %v1242_v61 = vpop.f32.mrf.mxu1 }
  0xe5   : > { %v706_v58 = vmul.f32 %v1505_v37, %v670_v55  ;;  %v652_v59 = vsel %vm584_vm3, %v552_v43, %v620_v51  ;;  %vm587_vm5 = vcmp.gt.f32.partialorder %v555_v52, 0.0  ;;  %v623_v60 = vmul.f32 %v1500_v30, %v555_v52 }
  0xe6   : > { %v726_v62 = vadd.f32 %v1507_v38, %v690_v54  ;;  %v688_v63 = vmul.f32 %v1505_v37, %v652_v59  ;;  %v668_v0 = vsel %vm600_vm4, %v568_v47, %v636_v56  ;;  %v571_v1 = vadd.f32 %v1497_v25, %v535_v48  ;;  %v400_v2 = vpop.f32.mrf.mxu0  ;;  %v464_v10 = vpop.f32.mrf.mxu1 }
  0xe7   : > { %v742_v3 = vadd.f32 %v1507_v38, %v706_v58  ;;  %v704_v4 = vmul.f32 %v1505_v37, %v668_v0  ;;  %v655_v5 = vsel %vm587_vm5, %v555_v52, %v623_v60  ;;  %v517_v6 = vmul.f32 %v1495_v23, %v387_v49 }
  0xe8   : > { %v724_v7 = vadd.f32 %v1507_v38, %v688_v63  ;;  %v691_v8 = vmul.f32 %v1505_v37, %v655_v5  ;;  %vm603_vm6 = vcmp.gt.f32.partialorder %v571_v1, 0.0  ;;  %v639_v9 = vmul.f32 %v1500_v30, %v571_v1  ;;  %v1227_v15 = vpop.f32.mrf.mxu0  ;;  %v1243_v29 = vpop.f32.mrf.mxu1 }
  0xe9   : > { %v740_v11 = vadd.f32 %v1507_v38, %v704_v4  ;;  %v553_v12 = vadd.f32 %v1497_v25, %v517_v6  ;;  %v533_v13 = vmul.f32 %v1495_v23, %v451_v53  ;;  %v522_v14 = vmul.f32 %v1226_v57, %v1495_v23 }
  0xea   : > { %v727_v16 = vadd.f32 %v1507_v38, %v691_v8  ;;  %v671_v17 = vsel %vm603_vm6, %v571_v1, %v639_v9  ;;  %v538_v18 = vmul.f32 %v1242_v61, %v1495_v23  ;;  %v520_v19 = vmul.f32 %v1495_v23, %v400_v2  ;;  %v403_v34 = vpop.f32.mrf.mxu0  ;;  %v467_v46 = vpop.f32.mrf.mxu1 }
  0xeb   : > { %v707_v20 = vmul.f32 %v1505_v37, %v671_v17  ;;  %vm585_vm7 = vcmp.gt.f32.partialorder %v553_v12, 0.0  ;;  %v621_v21 = vmul.f32 %v1500_v30, %v553_v12  ;;  %v569_v22 = vadd.f32 %v1497_v25, %v533_v13 }
  0xec   : > { %v1111_v24 = vpack.c.bf16 %v727_v16, %v726_v62  ;;  %v558_v26 = vadd.f32 %v1497_v25, %v522_v14  ;;  %v574_v27 = vadd.f32 %v1497_v25, %v538_v18  ;;  %v556_v28 = vadd.f32 %v1497_v25, %v520_v19  ;;  %v1230_v51 = vpop.f32.mrf.mxu0  ;;  %v1246_v63 = vpop.f32.mrf.mxu1 }
  0xed   : > { %v743_v31 = vadd.f32 %v1507_v38, %v707_v20  ;;  %v653_v32 = vsel %vm585_vm7, %v553_v12, %v621_v21  ;;  %vm601_vm8 = vcmp.gt.f32.partialorder %v569_v22, 0.0  ;;  %v637_v33 = vmul.f32 %v1500_v30, %v569_v22 }
  0xee   : > { %1183 = vst [vmem:[%s1550_s10 + $0x8] sm:$0xff] %v1111_v24   ;;  %v689_v35 = vmul.f32 %v1505_v37, %v653_v32  ;;  %vm590_vm9 = vcmp.gt.f32.partialorder %v558_v26, 0.0  ;;  %v626_v36 = vmul.f32 %v1500_v30, %v558_v26  ;;  %vm606_vm10 = vcmp.gt.f32.partialorder %v574_v27, 0.0  ;;  %v416_v2 = vpop.f32.mrf.mxu0  ;;  %v480_v14 = vpop.f32.mrf.mxu1 }
  0xef   : > { %v1151_v39 = vpack.c.bf16 %v743_v31, %v742_v3  ;;  %v669_v40 = vsel %vm601_vm8, %v569_v22, %v637_v33  ;;  %v642_v41 = vmul.f32 %v1500_v30, %v574_v27  ;;  %vm588_vm11 = vcmp.gt.f32.partialorder %v556_v28, 0.0 }
  0xf0   : > { %v725_v42 = vadd.f32 %v1507_v38, %v689_v35  ;;  %v705_v43 = vmul.f32 %v1505_v37, %v669_v40  ;;  %v658_v44 = vsel %vm590_vm9, %v558_v26, %v626_v36  ;;  %v624_v45 = vmul.f32 %v1500_v30, %v556_v28  ;;  %v1231_v18 = vpop.f32.mrf.mxu0  ;;  %v1247_v32 = vpop.f32.mrf.mxu1 }
  0xf1   : > { %1191 = vst [vmem:[%s1550_s10 + $0x48] sm:$0xff] %v1151_v39   ;;  %v694_v47 = vmul.f32 %v1505_v37, %v658_v44  ;;  %v674_v48 = vsel %vm606_vm10, %v574_v27, %v642_v41  ;;  %v536_v49 = vmul.f32 %v1495_v23, %v464_v10  ;;  %v523_v50 = vmul.f32 %v1227_v15, %v1495_v23 }
  0xf2   : > { %v1106_v52 = vpack.c.bf16 %v725_v42, %v724_v7  ;;  %v741_v53 = vadd.f32 %v1507_v38, %v705_v43  ;;  %v710_v54 = vmul.f32 %v1505_v37, %v674_v48  ;;  %v656_v55 = vsel %vm588_vm11, %v556_v28, %v624_v45  ;;  %v419_v36 = vpop.f32.mrf.mxu0 }
  0xf3   : > { %v692_v56 = vmul.f32 %v1505_v37, %v656_v55  ;;  %v572_v57 = vadd.f32 %v1497_v25, %v536_v49  ;;  %v559_v58 = vadd.f32 %v1497_v25, %v523_v50  ;;  %v730_v60 = vadd.f32 %v1507_v38, %v694_v47  ;;  %v483_v49 = vpop.f32.mrf.mxu1 }
  0xf4   : > { %1107 = vst [vmem:[%s1550_s10] sm:$0xff] %v1106_v52   ;;  %v1146_v59 = vpack.c.bf16 %v741_v53, %v740_v11  ;;  %v539_v61 = vmul.f32 %v1243_v29, %v1495_v23  ;;  %v521_v62 = vmul.f32 %v1495_v23, %v403_v34  ;;  %v746_v0 = vadd.f32 %v1507_v38, %v710_v54  ;;  %v1234_v54 = vpop.f32.mrf.mxu0 }
  0xf5   : > { %vm604_vm12 = vcmp.gt.f32.partialorder %v572_v57, 0.0  ;;  %v640_v1 = vmul.f32 %v1500_v30, %v572_v57  ;;  %vm591_vm13 = vcmp.gt.f32.partialorder %v559_v58, 0.0  ;;  %v627_v3 = vmul.f32 %v1500_v30, %v559_v58 }
  0xf6   : > { %1190 = vst [vmem:[%s1550_s10 + $0x40] sm:$0xff] %v1146_v59   ;;  %v575_v4 = vadd.f32 %v1497_v25, %v539_v61  ;;  %v557_v5 = vadd.f32 %v1497_v25, %v521_v62  ;;  %v537_v6 = vmul.f32 %v1495_v23, %v467_v46  ;;  %v728_v7 = vadd.f32 %v1507_v38, %v692_v56 }
  0xf7   : > { %v672_v8 = vsel %vm604_vm12, %v572_v57, %v640_v1  ;;  %v526_v9 = vmul.f32 %v1230_v51, %v1495_v23  ;;  %v542_v10 = vmul.f32 %v1246_v63, %v1495_v23  ;;  %v659_v11 = vsel %vm591_vm13, %v559_v58, %v627_v3  ;;  %v1250_v3 = vpop.f32.mrf.mxu1 }
  0xf8   : > { %vm607_vm14 = vcmp.gt.f32.partialorder %v575_v4, 0.0  ;;  %v643_v12 = vmul.f32 %v1500_v30, %v575_v4  ;;  %v524_v13 = vmul.f32 %v1495_v23, %v416_v2  ;;  %v695_v15 = vmul.f32 %v1505_v37, %v659_v11 }
  0xf9   : > { %vm589_vm15 = vcmp.gt.f32.partialorder %v557_v5, 0.0  ;;  %v625_v16 = vmul.f32 %v1500_v30, %v557_v5  ;;  %v573_v17 = vadd.f32 %v1497_v25, %v537_v6  ;;  %v708_v19 = vmul.f32 %v1505_v37, %v672_v8  ;;  %v432_v6 = vpop.f32.mrf.mxu0 }
  0xfa   : > { %v675_v20 = vsel %vm607_vm14, %v575_v4, %v643_v12  ;;  %v562_v21 = vadd.f32 %v1497_v25, %v526_v9  ;;  %v578_v22 = vadd.f32 %v1497_v25, %v542_v10  ;;  %v731_v24 = vadd.f32 %v1507_v38, %v695_v15 }
  0xfb   : > { %v711_v26 = vmul.f32 %v1505_v37, %v675_v20  ;;  %v657_v27 = vsel %vm589_vm15, %v557_v5, %v625_v16  ;;  %vm605_vm0 = vcmp.gt.f32.partialorder %v573_v17, 0.0  ;;  %v641_v29 = vmul.f32 %v1500_v30, %v573_v17 }
  0xfc   : > { %v693_v28 = vmul.f32 %v1505_v37, %v657_v27  ;;  %vm594_vm1 = vcmp.gt.f32.partialorder %v562_v21, 0.0  ;;  %v630_v31 = vmul.f32 %v1500_v30, %v562_v21  ;;  %v1121_v33 = vpack.c.bf16 %v731_v24, %v730_v60 }
  0xfd   : > { %v747_v34 = vadd.f32 %v1507_v38, %v711_v26  ;;  %vm610_vm2 = vcmp.gt.f32.partialorder %v578_v22, 0.0  ;;  %v646_v35 = vmul.f32 %v1500_v30, %v578_v22  ;;  %v673_v40 = vsel %vm605_vm0, %v573_v17, %v641_v29  ;;  %v496_v17 = vpop.f32.mrf.mxu1 }
  0xfe   : > { %v729_v39 = vadd.f32 %v1507_v38, %v693_v28  ;;  %v662_v41 = vsel %vm594_vm1, %v562_v21, %v630_v31  ;;  %v560_v42 = vadd.f32 %v1497_v25, %v524_v13  ;;  %1185 = vst [vmem:[%s1550_s10 + $0x18] sm:$0xff] %v1121_v33   ;;  %v709_v44 = vmul.f32 %v1505_v37, %v673_v40  ;;  %v1235_v21 = vpop.f32.mrf.mxu0 }
  0xff   : > { %v1161_v43 = vpack.c.bf16 %v747_v34, %v746_v0  ;;  %v698_v45 = vmul.f32 %v1505_v37, %v662_v41  ;;  %v678_v46 = vsel %vm610_vm2, %v578_v22, %v646_v35  ;;  %v744_v50 = vadd.f32 %v1507_v38, %v708_v19 }
 0x100   : > { %v1116_v47 = vpack.c.bf16 %v729_v39, %v728_v7  ;;  %vm592_vm3 = vcmp.gt.f32.partialorder %v560_v42, 0.0  ;;  %v628_v48 = vmul.f32 %v1500_v30, %v560_v42  ;;  %v745_v51 = vadd.f32 %v1507_v38, %v709_v44  ;;  %v1251_v39 = vpop.f32.mrf.mxu1  ;;  %v435_v44 = vpop.f32.mrf.mxu0 }
 0x101   : > { %1193 = vst [vmem:[%s1550_s10 + $0x58] sm:$0xff] %v1161_v43   ;;  %v540_v52 = vmul.f32 %v1495_v23, %v480_v14  ;;  %v527_v53 = vmul.f32 %v1231_v18, %v1495_v23  ;;  %v714_v55 = vmul.f32 %v1505_v37, %v678_v46  ;;  %v543_v57 = vmul.f32 %v1247_v32, %v1495_v23 }
 0x102   : > { %1184 = vst [vmem:[%s1550_s10 + $0x10] sm:$0xff] %v1116_v47   ;;  %v660_v56 = vsel %vm592_vm3, %v560_v42, %v628_v48  ;;  %v525_v58 = vmul.f32 %v1495_v23, %v419_v36  ;;  %v1156_v59 = vpack.c.bf16 %v745_v51, %v744_v50  ;;  %v734_v60 = vadd.f32 %v1507_v38, %v698_v45 }
 0x103   : > { %v576_v61 = vadd.f32 %v1497_v25, %v540_v52  ;;  %v563_v62 = vadd.f32 %v1497_v25, %v527_v53  ;;  %v579_v63 = vadd.f32 %v1497_v25, %v543_v57  ;;  %v541_v1 = vmul.f32 %v1495_v23, %v483_v49  ;;  %v499_v53 = vpop.f32.mrf.mxu1 }
 0x104   : > { %v561_v0 = vadd.f32 %v1497_v25, %v525_v58  ;;  %v530_v2 = vmul.f32 %v1234_v54, %v1495_v23  ;;  %1192 = vst [vmem:[%s1550_s10 + $0x50] sm:$0xff] %v1156_v59   ;;  %v696_v4 = vmul.f32 %v1505_v37, %v660_v56  ;;  %v546_v16 = vmul.f32 %v1250_v3, %v1495_v23 }
 0x105   : > { %vm608_vm4 = vcmp.gt.f32.partialorder %v576_v61, 0.0  ;;  %v644_v5 = vmul.f32 %v1500_v30, %v576_v61  ;;  %vm595_vm5 = vcmp.gt.f32.partialorder %v563_v62, 0.0  ;;  %v631_v7 = vmul.f32 %v1500_v30, %v563_v62 }
 0x106   : > { %vm611_vm6 = vcmp.gt.f32.partialorder %v579_v63, 0.0  ;;  %v647_v8 = vmul.f32 %v1500_v30, %v579_v63  ;;  %vm593_vm7 = vcmp.gt.f32.partialorder %v561_v0, 0.0  ;;  %v629_v10 = vmul.f32 %v1500_v30, %v561_v0 }
 0x107   : > { %v676_v9 = vsel %vm608_vm4, %v576_v61, %v644_v5  ;;  %v577_v11 = vadd.f32 %v1497_v25, %v541_v1  ;;  %v566_v12 = vadd.f32 %v1497_v25, %v530_v2  ;;  %v663_v14 = vsel %vm595_vm5, %v563_v62, %v631_v7 }
 0x108   : > { %v712_v13 = vmul.f32 %v1505_v37, %v676_v9  ;;  %v679_v15 = vsel %vm611_vm6, %v579_v63, %v647_v8  ;;  %v699_v18 = vmul.f32 %v1505_v37, %v663_v14  ;;  %v661_v20 = vsel %vm593_vm7, %v561_v0, %v629_v10 }
 0x109   : > { %v715_v19 = vmul.f32 %v1505_v37, %v679_v15  ;;  %vm609_vm8 = vcmp.gt.f32.partialorder %v577_v11, 0.0  ;;  %v750_v22 = vadd.f32 %v1507_v38, %v714_v55  ;;  %v732_v24 = vadd.f32 %v1507_v38, %v696_v4 }
 0x10a   : > { %v697_v26 = vmul.f32 %v1505_v37, %v661_v20  ;;  %v645_v27 = vmul.f32 %v1500_v30, %v577_v11  ;;  %v748_v28 = vadd.f32 %v1507_v38, %v712_v13  ;;  %v735_v29 = vadd.f32 %v1507_v38, %v699_v18 }
 0x10b   : > { %v751_v31 = vadd.f32 %v1507_v38, %v715_v19  ;;  %v582_v32 = vadd.f32 %v1497_v25, %v546_v16  ;;  %v528_v35 = vmul.f32 %v1495_v23, %v432_v6  ;;  %v544_v36 = vmul.f32 %v1495_v23, %v496_v17 }
 0x10c   : > { %v733_v33 = vadd.f32 %v1507_v38, %v697_v26  ;;  %v677_v34 = vsel %vm609_vm8, %v577_v11, %v645_v27  ;;  %v1131_v40 = vpack.c.bf16 %v735_v29, %v734_v60  ;;  %v634_v43 = vmul.f32 %v1500_v30, %v566_v12 }
 0x10d   : > { %v1171_v41 = vpack.c.bf16 %v751_v31, %v750_v22  ;;  %v713_v42 = vmul.f32 %v1505_v37, %v677_v34  ;;  %vm598_vm9 = vcmp.gt.f32.partialorder %v566_v12, 0.0  ;;  %vm614_vm10 = vcmp.gt.f32.partialorder %v582_v32, 0.0 }
 0x10e   : > { %v1126_v45 = vpack.c.bf16 %v733_v33, %v732_v24  ;;  %v650_v46 = vmul.f32 %v1500_v30, %v582_v32  ;;  %1187 = vst [vmem:[%s1550_s10 + $0x28] sm:$0xff] %v1131_v40   ;;  %v564_v48 = vadd.f32 %v1497_v25, %v528_v35  ;;  %v580_v49 = vadd.f32 %v1497_v25, %v544_v36 }
 0x10f   : > { %1195 = vst [vmem:[%s1550_s10 + $0x68] sm:$0xff] %v1171_v41   ;;  %v749_v47 = vadd.f32 %v1507_v38, %v713_v42  ;;  %v531_v50 = vmul.f32 %v1235_v21, %v1495_v23  ;;  %v547_v51 = vmul.f32 %v1251_v39, %v1495_v23  ;;  %v529_v52 = vmul.f32 %v1495_v23, %v435_v44 }
 0x110   : > { %1186 = vst [vmem:[%s1550_s10 + $0x20] sm:$0xff] %v1126_v45   ;;  %v666_v55 = vsel %vm598_vm9, %v566_v12, %v634_v43  ;;  %vm596_vm11 = vcmp.gt.f32.partialorder %v564_v48, 0.0  ;;  %v632_v56 = vmul.f32 %v1500_v30, %v564_v48  ;;  %v682_v57 = vsel %vm614_vm10, %v582_v32, %v650_v46 }
 0x111   : > { %v1166_v54 = vpack.c.bf16 %v749_v47, %v748_v28  ;;  %v648_v58 = vmul.f32 %v1500_v30, %v580_v49  ;;  %v567_v59 = vadd.f32 %v1497_v25, %v531_v50  ;;  %v583_v60 = vadd.f32 %v1497_v25, %v547_v51 }
 0x112   : > { %vm612_vm12 = vcmp.gt.f32.partialorder %v580_v49, 0.0  ;;  %v565_v61 = vadd.f32 %v1497_v25, %v529_v52  ;;  %v545_v62 = vmul.f32 %v1495_v23, %v499_v53  ;;  %v702_v63 = vmul.f32 %v1505_v37, %v666_v55 }
 0x113   : > { %1194 = vst [vmem:[%s1550_s10 + $0x60] sm:$0xff] %v1166_v54   ;;  %v664_v0 = vsel %vm596_vm11, %v564_v48, %v632_v56  ;;  %vm599_vm13 = vcmp.gt.f32.partialorder %v567_v59, 0.0  ;;  %v635_v1 = vmul.f32 %v1500_v30, %v567_v59  ;;  %v718_v2 = vmul.f32 %v1505_v37, %v682_v57 }
 0x114   : > { %vm615_vm14 = vcmp.gt.f32.partialorder %v583_v60, 0.0  ;;  %v651_v3 = vmul.f32 %v1500_v30, %v583_v60  ;;  %vm597_vm15 = vcmp.gt.f32.partialorder %v565_v61, 0.0  ;;  %v680_v4 = vsel %vm612_vm12, %v580_v49, %v648_v58 }
 0x115   : > { %v667_v5 = vsel %vm599_vm13, %v567_v59, %v635_v1  ;;  %v633_v6 = vmul.f32 %v1500_v30, %v565_v61  ;;  %v581_v7 = vadd.f32 %v1497_v25, %v545_v62  ;;  %v700_v23 = vmul.f32 %v1505_v37, %v664_v0 }
 0x116   : > { %v703_v8 = vmul.f32 %v1505_v37, %v667_v5  ;;  %v683_v9 = vsel %vm615_vm14, %v583_v60, %v651_v3  ;;  %v738_v13 = vadd.f32 %v1507_v38, %v702_v63  ;;  %v716_v14 = vmul.f32 %v1505_v37, %v680_v4 }
 0x117   : > { %v719_v10 = vmul.f32 %v1505_v37, %v683_v9  ;;  %v665_v11 = vsel %vm597_vm15, %v565_v61, %v633_v6  ;;  %vm613_vm0 = vcmp.gt.f32.partialorder %v581_v7, 0.0  ;;  %v649_v12 = vmul.f32 %v1500_v30, %v581_v7 }
 0x118   : > { %v739_v25 = vadd.f32 %v1507_v38, %v703_v8  ;;  %v701_v15 = vmul.f32 %v1505_v37, %v665_v11  ;;  %v754_v16 = vadd.f32 %v1507_v38, %v718_v2  ;;  %v736_v19 = vadd.f32 %v1507_v38, %v700_v23 }
 0x119   : > { %v755_v17 = vadd.f32 %v1507_v38, %v719_v10  ;;  %v681_v18 = vsel %vm613_vm0, %v581_v7, %v649_v12  ;;  %v752_v24 = vadd.f32 %v1507_v38, %v716_v14 }
 0x11a   : > { %v1141_v30 = vpack.c.bf16 %v739_v25, %v738_v13  ;;  %v737_v20 = vadd.f32 %v1507_v38, %v701_v15  ;;  %v717_v21 = vmul.f32 %v1505_v37, %v681_v18 }
 0x11b   : > { %v1181_v22 = vpack.c.bf16 %v755_v17, %v754_v16 }
 0x11c   : > { %1189 = vst [vmem:[%s1550_s10 + $0x38] sm:$0xff] %v1141_v30   ;;  %v1136_v26 = vpack.c.bf16 %v737_v20, %v736_v19  ;;  %v753_v27 = vadd.f32 %v1507_v38, %v717_v21 }
 0x11d   : > { %1197 = vst [vmem:[%s1550_s10 + $0x78] sm:$0xff] %v1181_v22  }
 0x11e   : > { %1188 = vst [vmem:[%s1550_s10 + $0x30] sm:$0xff] %v1136_v26   ;;  %v1176_v37 = vpack.c.bf16 %v753_v27, %v752_v24 }
 0x120   : > { %1196 = vst [vmem:[%s1550_s10 + $0x70] sm:$0xff] %v1176_v37  }
 0x121   : > { %1328 = shalt.err (!%p1325_p3)
}
 0x122   : > { %s1329_s29 = scalar_lea.hbm %s1690_s24, 2048  ;;  %s1333_s5 = scalar_lea.hbm %s1741_s3, 65536 }
 0x123   : > { %p1330_p4 = scmp.ne.s32.totalorder %s1690_s24, %s1329_s29  ;;  %p1334_p9 = scmp.lt.s32.totalorder %s1690_s24, %s1741_s3 }
 0x124   : > { %p1335_p10 = scmp.lt.s32.totalorder %s1333_s5, %s1329_s29 }
 0x125   : > { %p1331_p7 = pnand %p1330_p4, %p1438_p5 }
 0x126   : > { %p1336_p11 = por %p1335_p10, %p1334_p9 }
 0x127   : > { %p1332_p8 = pneg %p1331_p7 }
 0x129   : > { %p1337_p12 = pnand %p1336_p11, %p1332_p8 }
 0x12b   : > { %1340 = shalt.err (!%p1337_p12)
}
 0x12c   : > { %s1378_s8 = smov 64   ;;  %s1379_s9 = smov 4  }
 0x12d   : > { %1256 = dma.vmem_to_hbm [thread:$0]  (%p1438_p5), %s1692_s17, 2048, %s1690_s24, %s1698_s16, %s1378_s8, %s1378_s8, %s1379_s9  }
 0x12e PF: > { %p1262_p13 = scmp.ge.s32.totalorder %s1375_s15, 2  ;;  %s945_s10 = sand.u32 1, %s1363_s12  }
 0x12f   : > { %s946_s11 = scalar_lea.sflag [#allocation3], %s945_s10 }
 0x130   : > { %p1259_p0 = pnand %p1262_p13, %p1442_p6 }
 0x132   : > { %p1260_p1 = pneg %p1259_p0 }
 0x134   : > { %1358 = dma.done.wait (%p1260_p1), %s946_s11, 2048  }
 0x135   : > { %1360 = vsyncadd (%p1260_p1), %s946_s11, 4294965248  ;;  %p13_p2 = scmp.ge.s32.totalorder %s1425_s18, 34   ;;  %s1744_s12 = smov %s1367_s13 }
 0x136   : > { %s1745_s13 = smov %s1371_s14  ;;  %s1746_s14 = smov %s1436_s21 }
 0x137   : > { %s1747_s15 = smov %s1425_s18  ;;  %15 = sbr.rel (!%p13_p2) target bundleno = 3 (0x3), region = 67 }
 0x13c   :  { %951 = vsyncpa [#allocation3], 1 }
 0x13d   :  { %953 = vsyncpa [#allocation3 + $0x1], 1 }

</bundles_post_ra>
